<compile_context>
chip_gen: v6e
topology: v6e:2x2x1
jax: 0.10.0
libtpu: 0.0.40
codegen_flags: <defaults>
</compile_context>

<pallas_src>
import jax
import jax.numpy as jnp
from jax import lax
from jax.experimental import pallas as pl
from jax.experimental.pallas import tpu as pltpu


# --------------------------------------------------------------------------- #
# kernel
# --------------------------------------------------------------------------- #
def residual_block_kernel(x_ref, w1_ref, w2_ref, sb_ref, o_ref):
    """Fused residual block on a (nb*H, W*C) lane-dense activation slab.

    x_ref  : (nb, H, W*Cin)     activations (bf16/f32), x-major / c-minor on lanes
    w1_ref : (3*W*Cin,  W*Cout) conv1 folded into a block-Toeplitz matrix
                                (one (W*Cin, W*Cout) band per kernel row dy)
    w2_ref : (3*W*Cout, W*Cout) conv2, same encoding
    sb_ref : (4, W*Cout) f32    folded BN params [s1, b1, s2, b2], channel tiled over W
    o_ref  : (nb, H, W*Cout) f32
    """
    nb, H, WC_in = x_ref.shape
    WC_out = o_ref.shape[2]
    M = nb * H

    x = x_ref[...].reshape(M, WC_in)          # merge batch-block into the row axis

    # per-image top / bottom row masks (the dy=0 / dy=2 taps read outside the image)
    row = lax.broadcasted_iota(jnp.int32, (M, 1), 0) % H
    not_top = row > 0
    not_bot = row < (H - 1)

    def conv3x3(a, w_ref):
        # Shift image rows by +-1 (zero fill at per-image boundaries) and fold the
        # three kernel rows into the contraction dim: one MXU matmul, K = 3*W*C.
        # The W (dx) taps and the channel contraction are already folded into the
        # band weight matrix, so there are no window slices / im2col copies here.
        zero_row = jnp.zeros((1, a.shape[1]), a.dtype)
        a_up = jnp.where(not_top,
                         jnp.concatenate([zero_row, a[:-1]], axis=0),
                         jnp.zeros_like(a))                    # row y holds a[y-1]
        a_dn = jnp.where(not_bot,
                         jnp.concatenate([a[1:], zero_row], axis=0),
                         jnp.zeros_like(a))                    # row y holds a[y+1]
        patch = jnp.concatenate([a_up, a, a_dn], axis=1)       # (M, 3*W*C)
        return jnp.dot(patch, w_ref[...], preferred_element_type=jnp.float32)

    sb = sb_ref[...]                                           # (4, W*Cout) f32
    s1, b1 = sb[0:1, :], sb[1:2, :]
    s2, b2 = sb[2:3, :], sb[3:4, :]

    # conv1 -> BN1 -> ReLU   (accumulate in f32, BN/ReLU in f32)
    h = jnp.maximum(conv3x3(x, w1_ref) * s1 + b1, 0.0)
    h = h.astype(x.dtype)                                      # bf16 feed for conv2

    # conv2 -> BN2 -> +residual -> ReLU
    out = conv3x3(h, w2_ref) * s2 + b2 + x.astype(jnp.float32)
    o_ref[...] = jnp.maximum(out, 0.0).reshape(nb, H, WC_out).astype(o_ref.dtype)


# --------------------------------------------------------------------------- #
# host-side weight folding
# --------------------------------------------------------------------------- #
def _folded_conv_weights(w_hwio, width):
    """(3, 3, Cin, Cout) HWIO -> (3*width*Cin, width*Cout) block-Toeplitz matrix.

    band[dy*(W*Cin) + xi*Cin + ci, xo*Cout + co] = w[dy, xi - xo + 1, ci, co]
    (zero outside the 3-wide band -> the x-direction zero padding is implicit).
    """
    KH, KW, Cin, Cout = w_hwio.shape
    cols = jnp.arange(width)
    bands = []
    for dy in range(KH):
        m = jnp.zeros((width * Cin, width * Cout), w_hwio.dtype)
        for dx in range(KW):
            # input column xi feeds tap dx of output column xo when xi == xo + dx - 1
            shift = (cols[:, None] == cols[None, :] + (dx - 1)).astype(w_hwio.dtype)
            m = m + jnp.kron(shift, w_hwio[dy, dx])
        bands.append(m)
    return jnp.concatenate(bands, axis=0)      # (3*W*Cin, W*Cout), dy-major rows


def _batch_block(n):
    """Largest divisor of n that still leaves >=2 grid steps (feeds both v7x TCs)."""
    if n <= 1:
        return 1
    for nb in range(n // 2, 0, -1):
        if n % nb == 0:
            return nb
    return 1


# --------------------------------------------------------------------------- #
# wrapper
# --------------------------------------------------------------------------- #
def residual_block(x_nchw, w1_oihw, w2_oihw, bn1, bn2, eps=1e-5,
                   compute_dtype=jnp.bfloat16):
    """ResidualBlock forward. x_nchw: (N, C, H, W) f32; weights OIHW; BN = (g, b, m, v)."""
    N, Cin, H, W = x_nchw.shape
    Cout = w1_oihw.shape[0]
    assert Cin == Cout, "identity residual path requires Cin == Cout (no downsample)"
    assert w1_oihw.shape == (Cout, Cin, 3, 3) and w2_oihw.shape == (Cout, Cout, 3, 3)

    # fold inference-mode BN into per-channel scale/bias, tiled over W to match the
    # (x-major, c-minor) lane layout
    def fold(p):
        g, b, m, v = p
        s = g / jnp.sqrt(v + eps)
        return s, b - m * s

    s1, b1 = fold(bn1)
    s2, b2 = fold(bn2)
    sb = jnp.stack([jnp.tile(s1, W), jnp.tile(b1, W),
                    jnp.tile(s2, W), jnp.tile(b2, W)]).astype(jnp.float32)

    # NCHW -> (N, H, W*C): lane-dense activation layout (W*C = 128 at the test shape)
    x_flat = jnp.transpose(x_nchw, (0, 2, 3, 1)).reshape(N, H, W * Cin)
    x_flat = x_flat.astype(compute_dtype)

    w1_b = _folded_conv_weights(jnp.transpose(w1_oihw, (2, 3, 1, 0)), W).astype(compute_dtype)
    w2_b = _folded_conv_weights(jnp.transpose(w2_oihw, (2, 3, 1, 0)), W).astype(compute_dtype)

    nb = _batch_block(N)
    grid = (N // nb,)

    # VMEM footprint is tiny (<1 MiB: weights 2x(3*W*C, W*C) + a few activation slabs),
    # so the default scoped-VMEM limit is plenty on v5e/v6e/v7x.
    out_flat = pl.pallas_call(
        residual_block_kernel,
        out_shape=jax.ShapeDtypeStruct((N, H, W * Cout), jnp.float32),
        grid_spec=pltpu.PrefetchScalarGridSpec(
            num_scalar_prefetch=0,
            grid=grid,
            in_specs=[
                pl.BlockSpec((nb, H, W * Cin), lambda i: (i, 0, 0)),
                pl.BlockSpec((3 * W * Cin, W * Cout), lambda i: (0, 0)),   # resident
                pl.BlockSpec((3 * W * Cout, W * Cout), lambda i: (0, 0)),  # resident
                pl.BlockSpec((4, W * Cout), lambda i: (0, 0)),             # resident
            ],
            out_specs=pl.BlockSpec((nb, H, W * Cout), lambda i: (i, 0, 0)),
        ),
        compiler_params=pltpu.CompilerParams(
            dimension_semantics=("parallel",)),
    )(x_flat, w1_b, w2_b, sb)

    return jnp.transpose(out_flat.reshape(N, H, W, Cout), (0, 3, 1, 2))   # -> NCHW


# --------------------------------------------------------------------------- #
# pure-JAX references (correctness check)
# --------------------------------------------------------------------------- #
def _conv(a, w):
    return lax.conv_general_dilated(
        a, w, window_strides=(1, 1), padding=((1, 1), (1, 1)),
        dimension_numbers=('NCHW', 'OIHW', 'NCHW'),
        precision=lax.Precision.HIGHEST)


def _bn(a, p, eps):
    g, b, m, v = p
    s = g / jnp.sqrt(v + eps)
    return a * s[None, :, None, None] + (b - m * s)[None, :, None, None]


def residual_block_reference(x, w1, w2, bn1, bn2, eps=1e-5):
    """Exact f32 reference (PyTorch inference semantics)."""
    out = jnp.maximum(_bn(_conv(x, w1), bn1, eps), 0.0)
    out = _bn(_conv(out, w2), bn2, eps) + x
    return jnp.maximum(out, 0.0)


def residual_block_reference_bf16(x, w1, w2, bn1, bn2, eps=1e-5):
    """Reference matching the kernel's precision: bf16 inputs/weights/intermediate,
    f32 accumulation — used as the tight structural check."""
    q = lambda a: a.astype(jnp.bfloat16).astype(jnp.float32)
    xq = q(x)
    h = q(jnp.maximum(_bn(_conv(xq, q(w1)), bn1, eps), 0.0))
    out = _bn(_conv(h, q(w2)), bn2, eps) + xq
    return jnp.maximum(out, 0.0)


# --------------------------------------------------------------------------- #
if __name__ == "__main__":
    # Cin == Cout, stride=1, no downsample; W*C = 128 -> fully lane-dense layout.
    N, C, H, W = 2, 8, 16, 16

    key = jax.random.PRNGKey(0)
    keys = jax.random.split(key, 9)
    x = jax.random.normal(keys[0], (N, C, H, W), jnp.float32)
    w1 = 0.1 * jax.random.normal(keys[1], (C, C, 3, 3), jnp.float32)   # OIHW
    w2 = 0.1 * jax.random.normal(keys[2], (C, C, 3, 3), jnp.float32)

    bn1 = (1.0 + 0.1 * jax.random.normal(keys[3], (C,), jnp.float32),      # gamma
           0.1 * jax.random.normal(keys[4], (C,), jnp.float32),            # beta
           0.1 * jax.random.normal(keys[5], (C,), jnp.float32),            # running_mean
           jnp.abs(jax.random.normal(keys[6], (C,), jnp.float32)) + 0.5)   # running_var
    bn2 = (1.0 + 0.1 * jax.random.normal(keys[7], (C,), jnp.float32),
           0.1 * jax.random.normal(keys[8], (C,), jnp.float32),
           jnp.zeros((C,), jnp.float32),
           jnp.ones((C,), jnp.float32))

    out = residual_block(x, w1, w2, bn1, bn2)
    out = jax.block_until_ready(out)
    assert out.shape == (N, C, H, W)

    ref_bf16 = residual_block_reference_bf16(x, w1, w2, bn1, bn2)
    ref_f32 = residual_block_reference(x, w1, w2, bn1, bn2)
    err_bf16 = float(jnp.max(jnp.abs(out - ref_bf16)))
    err_f32 = float(jnp.max(jnp.abs(out - ref_f32)))

    # tight structural check against a reference with matching bf16-in / f32-accumulate precision
    assert jnp.allclose(out, ref_bf16, atol=2.5e-2, rtol=2.5e-2), \
        f"bf16-precision reference: max abs err = {err_bf16}"
    # end-to-end check against the exact f32 module semantics (bf16 quantization budget)
    assert jnp.allclose(out, ref_f32, atol=6e-2, rtol=6e-2), \
        f"f32 reference: max abs err = {err_f32}"

    print("KERNEL_OK")
</pallas_src>

<mosaic_0001>
module attributes {stable_mosaic.version = 11 : i64} {
  func.func @residual_block_kernel(%arg0: i32, %arg1: memref<1x16x128xbf16, #tpu.memory_space<vmem>>, %arg2: memref<384x128xbf16, #tpu.memory_space<vmem>>, %arg3: memref<384x128xbf16, #tpu.memory_space<vmem>>, %arg4: memref<4x128xf32, #tpu.memory_space<vmem>>, %arg5: memref<1x16x128xf32, #tpu.memory_space<vmem>>) attributes {dimension_semantics = [#tpu.dimension_semantics<parallel>], iteration_bounds = array<i64: 2>, scalar_prefetch = 0 : i64, scratch_operands = 0 : i64, tpu.core_type = #tpu.core_type<tc>, window_params = [{transform_indices = @transform_0, window_bounds = array<i64: 1, 16, 128>}, {pipeline_mode = #tpu.pipeline_mode<synchronous>, transform_indices = @transform_1, window_bounds = array<i64: 384, 128>}, {pipeline_mode = #tpu.pipeline_mode<synchronous>, transform_indices = @transform_2, window_bounds = array<i64: 384, 128>}, {pipeline_mode = #tpu.pipeline_mode<synchronous>, transform_indices = @transform_3, window_bounds = array<i64: 4, 128>}, {transform_indices = @transform_4, window_bounds = array<i64: 1, 16, 128>}]} {
    %c0 = arith.constant 0 : index
    %c0_0 = arith.constant 0 : index
    %c0_1 = arith.constant 0 : index
    %0 = vector.load %arg1[%c0, %c0_0, %c0_1] : memref<1x16x128xbf16, #tpu.memory_space<vmem>>, vector<1x16x128xbf16>
    %1 = vector.shape_cast %0 : vector<1x16x128xbf16> to vector<16x128xbf16>
    %2 = tpu.iota {dimensions = array<i32: 0>} : vector<16x1xi32>
    %c16_i32 = arith.constant 16 : i32
    %c0_i32 = arith.constant 0 : i32
    %3 = arith.cmpi eq, %c16_i32, %c0_i32 : i32
    %c1_i32 = arith.constant 1 : i32
    %4 = arith.select %3, %c1_i32, %c16_i32 : i32
    %5 = vector.broadcast %4 : i32 to vector<16x1xi32>
    %6 = arith.remsi %2, %5 : vector<16x1xi32>
    %c0_i32_2 = arith.constant 0 : i32
    %7 = vector.broadcast %c0_i32_2 : i32 to vector<16x1xi32>
    %8 = arith.cmpi ne, %6, %7 : vector<16x1xi32>
    %c0_i32_3 = arith.constant 0 : i32
    %9 = vector.broadcast %c0_i32_3 : i32 to vector<16x1xi32>
    %10 = arith.cmpi slt, %6, %9 : vector<16x1xi32>
    %c0_i32_4 = arith.constant 0 : i32
    %11 = arith.cmpi slt, %4, %c0_i32_4 : i32
    %12 = vector.broadcast %11 : i1 to vector<16x1xi1>
    %13 = vector.broadcast %12 : vector<16x1xi1> to vector<16x1xi1>
    %14 = arith.xori %10, %13 : vector<16x1xi1>
    %15 = arith.andi %14, %8 : vector<16x1xi1>
    %16 = vector.broadcast %4 : i32 to vector<16x1xi32>
    %17 = arith.addi %6, %16 : vector<16x1xi32>
    %18 = arith.select %15, %17, %6 : vector<16x1xi1>, vector<16x1xi32>
    %c0_i32_5 = arith.constant 0 : i32
    %19 = vector.broadcast %c0_i32_5 : i32 to vector<16x1xi32>
    %20 = arith.cmpi sgt, %18, %19 : vector<16x1xi32>
    %c15_i32 = arith.constant 15 : i32
    %21 = vector.broadcast %c15_i32 : i32 to vector<16x1xi32>
    %22 = arith.cmpi slt, %18, %21 : vector<16x1xi32>
    %c0_6 = arith.constant 0 : index
    %c0_7 = arith.constant 0 : index
    %23 = vector.load %arg4[%c0_6, %c0_7] : memref<4x128xf32, #tpu.memory_space<vmem>>, vector<4x128xf32>
    %24 = vector.extract_strided_slice %23 {offsets = [0, 0], sizes = [1, 128], strides = [1, 1]} : vector<4x128xf32> to vector<1x128xf32>
    %25 = vector.extract_strided_slice %23 {offsets = [1, 0], sizes = [1, 128], strides = [1, 1]} : vector<4x128xf32> to vector<1x128xf32>
    %26 = vector.extract_strided_slice %23 {offsets = [2, 0], sizes = [1, 128], strides = [1, 1]} : vector<4x128xf32> to vector<1x128xf32>
    %27 = vector.extract_strided_slice %23 {offsets = [3, 0], sizes = [1, 128], strides = [1, 1]} : vector<4x128xf32> to vector<1x128xf32>
    %cst = arith.constant 0.000000e+00 : bf16
    %28 = vector.broadcast %cst : bf16 to vector<1x128xbf16>
    %29 = vector.extract_strided_slice %1 {offsets = [0, 0], sizes = [15, 128], strides = [1, 1]} : vector<16x128xbf16> to vector<15x128xbf16>
    %30 = tpu.concatenate %28, %29 in 0 : vector<1x128xbf16>, vector<15x128xbf16> -> vector<16x128xbf16>
    %cst_8 = arith.constant 0.000000e+00 : bf16
    %31 = vector.broadcast %cst_8 : bf16 to vector<16x128xbf16>
    %32 = vector.shape_cast %20 : vector<16x1xi1> to vector<16x1xi1>
    %33 = vector.broadcast %32 : vector<16x1xi1> to vector<16x128xi1>
    %34 = arith.select %33, %30, %31 : vector<16x128xi1>, vector<16x128xbf16>
    %35 = vector.extract_strided_slice %1 {offsets = [1, 0], sizes = [15, 128], strides = [1, 1]} : vector<16x128xbf16> to vector<15x128xbf16>
    %36 = tpu.concatenate %35, %28 in 0 : vector<15x128xbf16>, vector<1x128xbf16> -> vector<16x128xbf16>
    %cst_9 = arith.constant 0.000000e+00 : bf16
    %37 = vector.broadcast %cst_9 : bf16 to vector<16x128xbf16>
    %38 = vector.shape_cast %22 : vector<16x1xi1> to vector<16x1xi1>
    %39 = vector.broadcast %38 : vector<16x1xi1> to vector<16x128xi1>
    %40 = arith.select %39, %36, %37 : vector<16x128xi1>, vector<16x128xbf16>
    %41 = tpu.concatenate %34, %1, %40 in 1 : vector<16x128xbf16>, vector<16x128xbf16>, vector<16x128xbf16> -> vector<16x384xbf16>
    %c0_10 = arith.constant 0 : index
    %c0_11 = arith.constant 0 : index
    %42 = vector.load %arg2[%c0_10, %c0_11] : memref<384x128xbf16, #tpu.memory_space<vmem>>, vector<384x128xbf16>
    %cst_12 = arith.constant dense<0.000000e+00> : vector<16x128xf32>
    %43 = tpu.matmul %41, %42, %cst_12 {dimension_numbers = #tpu.dot_dimension_numbers<[1], [0], [0], [1], [0, 0, 1, 1], [], []>} : vector<16x384xbf16>, vector<384x128xbf16>, vector<16x128xf32> -> vector<16x128xf32>
    %44 = vector.broadcast %24 : vector<1x128xf32> to vector<16x128xf32>
    %45 = arith.mulf %43, %44 : vector<16x128xf32>
    %46 = vector.broadcast %25 : vector<1x128xf32> to vector<16x128xf32>
    %47 = arith.addf %45, %46 : vector<16x128xf32>
    %cst_13 = arith.constant 0.000000e+00 : f32
    %48 = vector.broadcast %cst_13 : f32 to vector<16x128xf32>
    %49 = arith.maximumf %47, %48 : vector<16x128xf32>
    %50 = arith.truncf %49 : vector<16x128xf32> to vector<16x128xbf16>
    %cst_14 = arith.constant 0.000000e+00 : bf16
    %51 = vector.broadcast %cst_14 : bf16 to vector<1x128xbf16>
    %52 = vector.extract_strided_slice %50 {offsets = [0, 0], sizes = [15, 128], strides = [1, 1]} : vector<16x128xbf16> to vector<15x128xbf16>
    %53 = tpu.concatenate %51, %52 in 0 : vector<1x128xbf16>, vector<15x128xbf16> -> vector<16x128xbf16>
    %cst_15 = arith.constant 0.000000e+00 : bf16
    %54 = vector.broadcast %cst_15 : bf16 to vector<16x128xbf16>
    %55 = vector.shape_cast %20 : vector<16x1xi1> to vector<16x1xi1>
    %56 = vector.broadcast %55 : vector<16x1xi1> to vector<16x128xi1>
    %57 = arith.select %56, %53, %54 : vector<16x128xi1>, vector<16x128xbf16>
    %58 = vector.extract_strided_slice %50 {offsets = [1, 0], sizes = [15, 128], strides = [1, 1]} : vector<16x128xbf16> to vector<15x128xbf16>
    %59 = tpu.concatenate %58, %51 in 0 : vector<15x128xbf16>, vector<1x128xbf16> -> vector<16x128xbf16>
    %cst_16 = arith.constant 0.000000e+00 : bf16
    %60 = vector.broadcast %cst_16 : bf16 to vector<16x128xbf16>
    %61 = vector.shape_cast %22 : vector<16x1xi1> to vector<16x1xi1>
    %62 = vector.broadcast %61 : vector<16x1xi1> to vector<16x128xi1>
    %63 = arith.select %62, %59, %60 : vector<16x128xi1>, vector<16x128xbf16>
    %64 = tpu.concatenate %57, %50, %63 in 1 : vector<16x128xbf16>, vector<16x128xbf16>, vector<16x128xbf16> -> vector<16x384xbf16>
    %c0_17 = arith.constant 0 : index
    %c0_18 = arith.constant 0 : index
    %65 = vector.load %arg3[%c0_17, %c0_18] : memref<384x128xbf16, #tpu.memory_space<vmem>>, vector<384x128xbf16>
    %cst_19 = arith.constant dense<0.000000e+00> : vector<16x128xf32>
    %66 = tpu.matmul %64, %65, %cst_19 {dimension_numbers = #tpu.dot_dimension_numbers<[1], [0], [0], [1], [0, 0, 1, 1], [], []>} : vector<16x384xbf16>, vector<384x128xbf16>, vector<16x128xf32> -> vector<16x128xf32>
    %67 = vector.broadcast %26 : vector<1x128xf32> to vector<16x128xf32>
    %68 = arith.mulf %66, %67 : vector<16x128xf32>
    %69 = vector.broadcast %27 : vector<1x128xf32> to vector<16x128xf32>
    %70 = arith.addf %68, %69 : vector<16x128xf32>
    %71 = arith.extf %1 : vector<16x128xbf16> to vector<16x128xf32>
    %72 = arith.addf %70, %71 : vector<16x128xf32>
    %cst_20 = arith.constant 0.000000e+00 : f32
    %73 = vector.broadcast %cst_20 : f32 to vector<16x128xf32>
    %74 = arith.maximumf %72, %73 : vector<16x128xf32>
    %75 = vector.shape_cast %74 : vector<16x128xf32> to vector<1x16x128xf32>
    %c0_21 = arith.constant 0 : index
    %c0_22 = arith.constant 0 : index
    %c0_23 = arith.constant 0 : index
    %76 = vector.load %arg5[%c0_21, %c0_22, %c0_23] : memref<1x16x128xf32, #tpu.memory_space<vmem>>, vector<1x16x128xf32>
    tpu.vector_store %arg5[%c0_21, %c0_22, %c0_23], %75 {strides = array<i32>} : memref<1x16x128xf32, #tpu.memory_space<vmem>>, vector<1x16x128xf32>,
    return
  }
  func.func @transform_0(%arg0: i32) -> (i32, i32, i32) {
    %c0_i32 = arith.constant 0 : i32
    %c0_i32_0 = arith.constant 0 : i32
    %c0_i32_1 = arith.constant 0 : i32
    return %arg0, %c0_i32, %c0_i32_0 : i32, i32, i32
  }
  func.func @transform_1(%arg0: i32) -> (i32, i32) {
    %c0_i32 = arith.constant 0 : i32
    %c0_i32_0 = arith.constant 0 : i32
    %c0_i32_1 = arith.constant 0 : i32
    return %c0_i32, %c0_i32_0 : i32, i32
  }
  func.func @transform_2(%arg0: i32) -> (i32, i32) {
    %c0_i32 = arith.constant 0 : i32
    %c0_i32_0 = arith.constant 0 : i32
    %c0_i32_1 = arith.constant 0 : i32
    return %c0_i32, %c0_i32_0 : i32, i32
  }
  func.func @transform_3(%arg0: i32) -> (i32, i32) {
    %c0_i32 = arith.constant 0 : i32
    %c0_i32_0 = arith.constant 0 : i32
    %c0_i32_1 = arith.constant 0 : i32
    return %c0_i32, %c0_i32_0 : i32, i32
  }
  func.func @transform_4(%arg0: i32) -> (i32, i32, i32) {
    %c0_i32 = arith.constant 0 : i32
    %c0_i32_0 = arith.constant 0 : i32
    %c0_i32_1 = arith.constant 0 : i32
    return %arg0, %c0_i32, %c0_i32_0 : i32, i32, i32
  }
}

</mosaic_0001>

<bundles_post_ra>
// kernel: tpu_custom_call.1
= control target key start
LH: loop header
LB: loop body
LE: loop exit
PB: predicated region body
PF: predicated region fallthrough
CT: control target
= control target key end

     0   :  { %9 = vsyncpa [#allocation3], 0  ;;  %s1821_s0 = inlined_call_operand.hbm [shape: bf16[2,16,128], index: 0, kind: input, shape index: {}]   ;;  %s1822_s1 = inlined_call_operand.hbm [shape: bf16[384,128], index: 1, kind: input, shape index: {}]   ;;  %s1823_s2 = inlined_call_operand.hbm [shape: bf16[384,128], index: 2, kind: input, shape index: {}]   ;;  %s1824_s3 = inlined_call_operand.vmem [shape: f32[4,128], index: 3, kind: input, shape index: {}]   ;;  %s1825_s4 = inlined_call_operand.hbm [shape: f32[2,16,128], index: 4, kind: output, shape index: {}]  }
   0x1   :  { %11 = vsyncpa [#allocation3 + $0x1], 0 }
   0x2   :  { %12 = vsyncpa [#allocation6], 0 }
   0x3   :  { %13 = vsyncpa [#allocation4], 0 }
   0x4   :  { %15 = vsyncpa [#allocation4 + $0x1], 0  ;;  %s1526_s15 = smov 0   ;;  %s1528_s16 = smov 0  }
   0x5   :  { %s1530_s17 = smov 0   ;;  %s1532_s18 = smov 0  }
   0x6 LB: > { %s1547_s19 = sadd.s32 4294967295, %s1487_s18   ;;  %s1037_s20 = sadd.s32 4294967294, %s1487_s18   ;;  %s1487_s18 = sphi %s1532_s18, %s1860_s18   ;;  %s1483_s17 = sphi %s1530_s17, %s1859_s17   ;;  %s1479_s16 = sphi %s1528_s16, %s1858_s16   ;;  %s1475_s15 = sphi %s1526_s15, %s1857_s15  }
   0x7   : > { %p41_p0 = scmp.ne.s32.totalorder %s1479_s16, %s1475_s15  ;;  %p1826_p1 = scmp.eq.s32.totalorder %s1547_s19, 0 }
   0x8   : > { %p128_p2 = scmp.eq.s32.totalorder %s1547_s19, 1  ;;  %p134_p3 = scmp.eq.s32.totalorder %s1037_s20, 1 }
   0x9   : > { %p1556_p4 = por %p1826_p1, %p41_p0  ;;  %p1038_p5 = scmp.ge.s32.totalorder %s1487_s18, 1 }
   0xa   : > { %p1561_p6 = por %p134_p3, %p41_p0  ;;  %p141_p7 = scmp.lt.s32.totalorder %s1487_s18, 3 }
   0xb   : > { %s1830_s21 = scalar_select %p1556_p4, 1, 0 }
   0xc   : > { %s1831_s22 = scalar_select %p1561_p6, 1, 0 }
   0xd   : > { %p1566_p8 = pnand %p1038_p5, %p141_p7  ;;  %s1489_s24 = smov [#allocation5]  }
   0xe   : > { %s153_s25 = sshll.u32 %s1489_s24, 4  ;;  %s1490_s27 = smov [#allocation7]   ;;  %s154_s25 = int_to_ptr.vmem [resolvable:$true] %s153_s25 }
   0xf   : > { %s1832_s23 = scalar_select %p1566_p8, 1, 0 }
  0x10   : > { %p1226_p9 = pneg %p1566_p8  ;;  %s166_s28 = sshll.u32 %s1490_s27, 4  ;;  %s167_s28 = int_to_ptr.vmem [resolvable:$true] %s166_s28 }
  0x11   : > { %s1350_s29 = scalar_lea.vmem %s154_s25, 3072  ;;  %p1358_p5 = scmp.lt.s32.totalorder %s154_s25, %s154_s25 }
  0x12   : > { %p1575_p11 = pnand %p1226_p9, %p1826_p1  ;;  %p1351_p13 = scmp.ne.s32.totalorder %s154_s25, %s1350_s29 }
  0x13   : > { %p1359_p7 = scmp.lt.s32.totalorder %s1350_s29, %s1350_s29 }
  0x14   : > { %p1341_p12 = pneg %p1575_p11 }
  0x15   : > { %p1360_p10 = por %p1359_p7, %p1358_p5 }
  0x16   : > { %p1353_p0 = pnand %p1351_p13, %p1341_p12 }
  0x18   : > { %p1354_p3 = pneg %p1353_p0 }
  0x1a   : > { %p1361_p9 = pnand %p1360_p10, %p1354_p3 }
  0x1c   : > { %1364 = shalt.err (!%p1361_p9)
}
  0x1d   : > { %s1491_s30 = smov 64   ;;  %s1492_s5 = smov 4  }
  0x1e   : > { %1229 = dma.hbm_to_vmem [thread:$0]  (!%p1575_p11), %s1822_s1, 3072, %s154_s25, [#allocation6], %s1491_s30, %s1491_s30, %s1492_s5  }
  0x1f   : > { %s1376_s8 = scalar_lea.vmem %s167_s28, 3072  ;;  %p1384_p10 = scmp.lt.s32.totalorder %s167_s28, %s167_s28 }
  0x20   : > { %p1377_p13 = scmp.ne.s32.totalorder %s167_s28, %s1376_s8  ;;  %p1385_p3 = scmp.lt.s32.totalorder %s1376_s8, %s1376_s8 }
  0x22   : > { %p1379_p0 = pnand %p1377_p13, %p1341_p12  ;;  %p1386_p7 = por %p1385_p3, %p1384_p10 }
  0x24   : > { %p1380_p5 = pneg %p1379_p0 }
  0x26   : > { %p1387_p9 = pnand %p1386_p7, %p1380_p5 }
  0x28   : > { %1390 = shalt.err (!%p1387_p9)
}
  0x29   : > { %1232 = dma.hbm_to_vmem [thread:$0]  (!%p1575_p11), %s1823_s2, 3072, %s167_s28, [#allocation6], %s1491_s30, %s1491_s30, %s1492_s5  }
  0x2a   : > { %s1604_s11 = sadd.s32 1, %s1487_s18   ;;  %s28_s12 = sadd.s32 1, %s1483_s17 }
  0x2b   : > { %s25_s13 = ssub.s32 %s1487_s18, %s1604_s11  ;;  %p35_p12 = scmp.ne.s32.totalorder %s1483_s17, %s1479_s16 }
  0x2c   : > { %p26_p13 = scmp.eq.s32.totalorder %s25_s13, 0  ;;  %p36_p0 = scmp.eq.s32.totalorder %s1487_s18, 0 }
  0x2d   : > { %p1614_p5 = por %p128_p2, %p35_p12  ;;  %p1243_p10 = scmp.lt.s32.totalorder %s1487_s18, 2 }
  0x2e   : > { %s1620_s20 = scalar_select %p26_p13, %s1483_s17, %s28_s12  }
  0x2f   : > { %s1834_s14 = scalar_select %p1614_p5, 1, 0 }
  0x30   : > { %p37_p3 = por %p36_p0, %p35_p12  ;;  %s183_s24 = sand.u32 1, %s1483_s17  }
  0x31   : > { %s1042_s25 = sshll.u32 %s183_s24, 3  ;;  %s1110_s26 = sshll.u32 %s1487_s18, 7 }
  0x32   : > { %s1627_s29 = scalar_lea.hbm %s1821_s0, %s1110_s26  ;;  %s187_s6 = scalar_lea.vmem [#allocation2], %s1042_s25 }
  0x33   : > { %s194_s7 = sshll.u32 %s187_s6, 4  ;;  %p1631_p2 = pnand %p1243_p10, %p37_p3  ;;  %s1629_s7 = int_to_ptr.vmem [resolvable:$true] %s194_s7 }
  0x34   : > { %s1635_s9 = scalar_lea.sflag [#allocation3], %s183_s24  ;;  %s1391_s10 = scalar_lea.hbm %s1627_s29, 128 }
  0x35   : > { %p1392_p11 = scmp.ne.s32.totalorder %s1627_s29, %s1391_s10  ;;  %p1393_p7 = pneg %p1631_p2 }
  0x36   : > { %s1396_s25 = scalar_lea.hbm %s1821_s0, 256  ;;  %p1397_p13 = scmp.lt.s32.totalorder %s1627_s29, %s1821_s0 }
  0x37   : > { %p1394_p9 = pnand %p1393_p7, %p1392_p11  ;;  %p1398_p0 = scmp.lt.s32.totalorder %s1396_s25, %s1391_s10 }
  0x39   : > { %p1395_p12 = pneg %p1394_p9  ;;  %p1399_p10 = por %p1398_p0, %p1397_p13 }
  0x3b   : > { %p1400_p3 = pnand %p1399_p10, %p1395_p12 }
  0x3d   : > { %1403 = shalt.err (!%p1400_p3)
}
  0x3e   : > { %s1404_s24 = scalar_lea.vmem %s1629_s7, 128  ;;  %s1493_s28 = smov [#allocation2]  }
  0x3f   : > { %p1405_p1 = scmp.ne.s32.totalorder %s1629_s7, %s1404_s24  ;;  %s1409_s6 = sshll.u32 %s1493_s28, 4  ;;  %s1410_s6 = int_to_ptr.vmem [resolvable:$false] %s1409_s6 }
  0x40   : > { %s1411_s12 = scalar_lea.vmem %s1410_s6, 256  ;;  %p1412_p9 = scmp.lt.s32.totalorder %s1629_s7, %s1410_s6 }
  0x41   : > { %p1407_p6 = pnand %p1405_p1, %p1393_p7  ;;  %p1413_p5 = scmp.lt.s32.totalorder %s1411_s12, %s1404_s24 }
  0x43   : > { %p1408_p11 = pneg %p1407_p6  ;;  %p1414_p4 = por %p1413_p5, %p1412_p9 }
  0x45   : > { %p1415_p8 = pnand %p1414_p4, %p1408_p11 }
  0x47   : > { %1418 = shalt.err (!%p1415_p8)
}
  0x48   : > { %1236 = dma.hbm_to_vmem [thread:$0]  (!%p1631_p2), %s1627_s29, 128, %s1629_s7, %s1635_s9, %s1491_s30, %s1491_s30, %s1492_s5  }
  0x49   : > { %p1836_p1 = scmp.ne.s32.totalorder %s1832_s23, 0 }
  0x4a   : > { %s1662_s10 = sand.u32 (!%p1836_p1), 1, %s1479_s16   ;;  %p1837_p4 = scmp.ne.s32.totalorder (!%p1836_p1), %s1830_s21, 0 }
  0x4b   : > { %206 = sbr.rel (%p1836_p1) target bundleno = 561 (0x231), region = 36  ;;  %s1046_s13 = sshll.u32 (!%p1836_p1), %s1662_s10, 3 }
  0x4c   : > { %s209_s25 = scalar_lea.sflag (!%p1836_p1), [#allocation3], %s1662_s10  ;;  %s1666_s26 = scalar_lea.vmem (!%p1836_p1), [#allocation2], %s1046_s13 }
  0x50   : > { %1462 = dma.done.wait (%p1837_p4), %s209_s25, 128  }
  0x51   : > { %1464 = vsyncadd (%p1837_p4), %s209_s25, 4294967168  ;;  %p1838_p6 = scmp.eq.s32.totalorder %s1547_s19, 0 }
  0x53   : > { %1466 = dma.done.wait (%p1838_p6), [#allocation6], 6144   ;;  %p1839_p8 = pmov %p1838_p6 }
  0x54   : > { %v1494_v0 = vmov 0.0   ;;  %vm1495_vm0 = vmmov 0   ;;  %v1289_v1 = vld [vmem:[#allocation5 + $0x78] sm:$0xff]   ;;  %v1292_v4 = vld [vmem:[#allocation5 + $0x70] sm:$0xff]   ;;  %v250_v7 = vlaneseq  ;;  %v1295_v8 = vld [vmem:[#allocation5 + $0x68] sm:$0xff]   ;;  %vm1496_vm1 = vmmov 1  }
  0x55   : > { %1468 = vsyncadd (%p1839_p8), [#allocation6], 4294961152  ;;  %1174 = vmatprep.subr.bf16.mxu1 %v1494_v0  ;;  %1190 = vmatprep.mubr.msk.bf16.mxu1 %vm1495_vm0, %v1494_v0  ;;  %v1290_v2 = vld [vmem:[#allocation5 + $0xb8] sm:$0xff]   ;;  %v1293_v5 = vld [vmem:[#allocation5 + $0xb0] sm:$0xff]   ;;  %vm315_vm3 = vcmask 1047552   ;;  %v1497_v31 = vmov 0  }
  0x56   : > { %1112 = vmatprep.subr.bf16.mxu0 %v1289_v1  ;;  %v1291_v3 = vld [vmem:[#allocation5 + $0x38] sm:$0xff]   ;;  %1175 = vmatpush3.bf16.msra.mxu1 %v1290_v2  ;;  %v1294_v6 = vld [vmem:[#allocation5 + $0x30] sm:$0xff]   ;;  %v1296_v9 = vld [vmem:[#allocation5 + $0xa8] sm:$0xff]   ;;  %v1681_v12 = vshrl.u32 %v250_v7, 7  ;;  %vm316_vm6 = vsmask.f32 7424 }
  0x57   : > { %1113 = vmatpush3.bf16.msra.mxu0 %v1291_v3  ;;  %1176 = vmatprep.subr.bf16.mxu1 %v1494_v0  ;;  %v1297_v10 = vld [vmem:[#allocation5 + $0x28] sm:$0xff]   ;;  %v1298_v11 = vld [vmem:[#allocation5 + $0x60] sm:$0xff]   ;;  %v1301_v15 = vld [vmem:[#allocation5 + $0x58] sm:$0xff]   ;;  %vm295_vm8 = vcmask 1040384   ;;  %vm296_vm9 = vsmask.f32 256 }
  0x58   : > { %1114 = vmatprep.subr.bf16.mxu0 %v1292_v4  ;;  %v1299_v13 = vld [vmem:[#allocation5 + $0xa0] sm:$0xff]   ;;  %v252_v16 = vadd.s32 8, %v1681_v12  ;;  %vm1685_vm2 = vmpackc.low %vm1496_vm1, %vm1496_vm1  ;;  %v1302_v18 = vld [vmem:[#allocation5 + $0x98] sm:$0xff]   ;;  %v257_v23 = vand.u32 15, %v1681_v12  ;;  %s1049_s30 = sshll.u32 %s1662_s10, 4  ;;  %s1111_s5 = sshll.u32 %s1547_s19, 8 }
  0x59   : > { %v1300_v14 = vld [vmem:[#allocation5 + $0x20] sm:$0xff]   ;;  %v1303_v19 = vld [vmem:[#allocation5 + $0x18] sm:$0xff]   ;;  %v1304_v20 = vld [vmem:[#allocation5 + $0x50] sm:$0xff]   ;;  %v306_v32 = vsel %vm1685_vm2, 65537, %v1497_v31  ;;  %s244_s29 = scalar_lea.vmem [#allocation8], %s1049_s30  ;;  %s1776_s27 = scalar_lea.hbm %s1825_s4, %s1111_s5 }
  0x5a   : > { %1177 = vmatpush3.bf16.msra.mxu1 %v1293_v5  ;;  %v264_v21 = vand.u32 15, %v252_v16  ;;  %v1305_v22 = vld [vmem:[#allocation5 + $0x90] sm:$0xff]   ;;  %v1307_v25 = vld [vmem:[#allocation5 + $0x48] sm:$0xff]   ;;  %vm1696_vm5 = vcmp.gt.s32.totalorder %v257_v23, 0  ;;  %v1310_v30 = vld [vmem:[#allocation5 + $0x40] sm:$0xff]   ;;  %v615_v23 = vsub.s32 1, %v1681_v12 }
  0x5b   : > { %1115 = vmatpush3.bf16.msra.mxu0 %v1294_v6  ;;  %1178 = vmatprep.subr.bf16.mxu1 %v1494_v0  ;;  %v1306_v24 = vld [vmem:[#allocation5 + $0x10] sm:$0xff]   ;;  %v1308_v26 = vld [vmem:[#allocation5 + $0x88] sm:$0xff]   ;;  %v1311_v34 = vld [vmem:[#allocation5 + $0x80] sm:$0xff]   ;;  %s945_s7 = sshll.u32 %s244_s29, 4  ;;  %s932_s24 = scalar_lea.sflag [#allocation4], %s1662_s10  ;;  %s1778_s7 = int_to_ptr.vmem [resolvable:$true] %s945_s7 }
  0x5c   : > { %1116 = vmatprep.subr.bf16.mxu0 %v1295_v8  ;;  %vm1692_vm4 = vcmp.lt.s32.totalorder %v264_v21, 15  ;;  %v1309_v28 = vld [vmem:[#allocation5 + $0x8] sm:$0xff]   ;;  %v1704_v33 = vld [vmem:[%s1666_s26] sm:$0xff]   ;;  %vm303_vm10 = vmpackc.low %vm1696_vm5, %vm1696_vm5  ;;  %s1419_s28 = scalar_lea.vmem %s1778_s7, 256  ;;  %p1854_p2 = scmp.ne.s32.totalorder %s1834_s14, 0 }
  0x5d   : > { %vm324_vm7 = vmpackc.low %vm1692_vm4, %vm1692_vm4  ;;  %v1312_v36 = vld [vmem:[#allocation5] sm:$0xff]   ;;  %v305_v38 = vsel %vm303_vm10, 65537, %v1497_v31  ;;  %v291_v39 = vshll.u32 %v1704_v33, 16  ;;  %557 = vmatprep.mubr.bf16.mxu0 %v1704_v33  ;;  %v288_v40 = vshrl.u32 %v1704_v33, 16  ;;  %v1314_v44 = vld [vmem:[#allocation7 + $0x78] sm:$0xff]   ;;  %v923_v43 = vunpack.c.l.bf16 %v1704_v33  ;;  %p1420_p5 = scmp.ne.s32.totalorder %s1778_s7, %s1419_s28  ;;  %s1498_s19 = smov [#allocation8]  }
  0x5e   : > { %1179 = vmatpush3.bf16.msra.mxu1 %v1296_v9  ;;  %v326_v35 = vsel %vm324_vm7, 65537, %v1497_v31  ;;  %vm1717_vm11 = vmand %vm315_vm3, %vm316_vm6  ;;  %v1051_v42 = vcombine.low %v305_v38, %v306_v32  ;;  %v1316_v49 = vld [vmem:[#allocation7 + $0xb8] sm:$0xff]   ;;  %v1317_v53 = vld [vmem:[#allocation7 + $0x70] sm:$0xff]   ;;  %s1423_s6 = sshll.u32 %s1498_s19, 4  ;;  %s1424_s6 = int_to_ptr.vmem [resolvable:$false] %s1423_s6 }
  0x5f   : > { %1117 = vmatpush3.bf16.msra.mxu0 %v1297_v10  ;;  %1180 = vmatprep.subr.bf16.mxu1 %v1494_v0  ;;  %v1052_v37 = vcombine.low %v306_v32, %v326_v35  ;;  %v312_v45 = vrot.slane %v291_v39, 1  ;;  %v290_v46 = vrot.slane %v288_v40, 7  ;;  %vm1728_vm13 = vmand %vm295_vm8, %vm296_vm9  ;;  %v1315_v50 = vld [vmem:[#allocation7 + $0x38] sm:$0xff]   ;;  %v1318_v56 = vld [vmem:[#allocation7 + $0x30] sm:$0xff]   ;;  %p1421_p7 = pnand %p1420_p5, %p1854_p2  ;;  %s1425_s12 = scalar_lea.vmem %s1424_s6, 512 }
  0x60   : > { %1118 = vmatprep.subr.bf16.mxu0 %v1298_v11  ;;  %vm1732_vm14 = vcmp.ne.s16.totalorder %v1051_v42, 0  ;;  %v1319_v57 = vld [vmem:[#allocation7 + $0xb0] sm:$0xff]   ;;  %v1320_v58 = vld [vmem:[#allocation7 + $0x68] sm:$0xff]   ;;  %v1323_v61 = vld [vmem:[#allocation7 + $0x60] sm:$0xff]   ;;  %p1426_p13 = scmp.lt.s32.totalorder %s1778_s7, %s1424_s6  ;;  %p1427_p0 = scmp.lt.s32.totalorder %s1425_s12, %s1419_s28 }
  0x61   : > { %vm1722_vm12 = vcmp.ne.s16.totalorder %v1052_v37, 0  ;;  %v313_v51 = vor.u32 %v312_v45, %v288_v40  ;;  %v293_v52 = vor.u32 %v291_v39, %v290_v46  ;;  %v1321_v59 = vld [vmem:[#allocation7 + $0x28] sm:$0xff]   ;;  %v1324_v62 = vld [vmem:[#allocation7 + $0x20] sm:$0xff]   ;;  %v1326_v1 = vld [vmem:[#allocation7 + $0x58] sm:$0xff]   ;;  %p1422_p12 = pneg %p1421_p7 }
  0x62   : > { %1181 = vmatpush3.bf16.msra.mxu1 %v1299_v13  ;;  %v1322_v60 = vld [vmem:[#allocation7 + $0xa8] sm:$0xff]   ;;  %v1325_v63 = vld [vmem:[#allocation7 + $0xa0] sm:$0xff]   ;;  %v1327_v2 = vld [vmem:[#allocation7 + $0x18] sm:$0xff]   ;;  %p1428_p10 = por %p1427_p0, %p1426_p13 }
  0x63   : > { %1119 = vmatpush3.bf16.msra.mxu0 %v1300_v14  ;;  %1182 = vmatprep.subr.bf16.mxu1 %v1494_v0  ;;  %v318_v54 = vsel %vm1717_vm11, %v313_v51, 0  ;;  %v298_v55 = vsel %vm1728_vm13, 0, %v293_v52  ;;  %v1328_v3 = vld [vmem:[#allocation7 + $0x98] sm:$0xff]   ;;  %v1329_v4 = vld [vmem:[#allocation7 + $0x50] sm:$0xff]   ;;  %v1332_v7 = vld [vmem:[#allocation7 + $0x48] sm:$0xff]  }
  0x64   : > { %1120 = vmatprep.subr.bf16.mxu0 %v1301_v15  ;;  %v1330_v5 = vld [vmem:[#allocation7 + $0x10] sm:$0xff]   ;;  %v1333_v8 = vld [vmem:[#allocation7 + $0x8] sm:$0xff]   ;;  %v1335_v10 = vld [vmem:[#allocation7 + $0x40] sm:$0xff]   ;;  %v609_v15 = vsub.s32 0, %v1681_v12  ;;  %p1429_p3 = pnand %p1428_p10, %p1422_p12 }
  0x65   : > { %v1331_v6 = vld [vmem:[#allocation7 + $0x90] sm:$0xff]   ;;  %v1334_v9 = vld [vmem:[#allocation7 + $0x88] sm:$0xff]   ;;  %v1336_v11 = vld [vmem:[#allocation7] sm:$0xff]  }
  0x66   : > { %1183 = vmatpush3.bf16.msra.mxu1 %v1302_v18  ;;  %v1337_v13 = vld [vmem:[#allocation7 + $0x80] sm:$0xff]   ;;  %v281_v17 = vld [vmem:[%s1824_s3] sm:$0xf] }
  0x67   : > { %1121 = vmatpush3.bf16.msra.mxu0 %v1303_v19  ;;  %1184 = vmatprep.subr.bf16.mxu1 %v1494_v0  ;;  %v610_v21 = vrot.slane %v281_v17, %v609_v15  ;;  %v616_v29 = vrot.slane %v281_v17, %v615_v23 }
  0x68   : > { %1122 = vmatprep.subr.bf16.mxu0 %v1304_v20 }
  0x6a   : > { %1185 = vmatpush3.bf16.msra.mxu1 %v1305_v22 }
  0x6b   : > { %1123 = vmatpush3.bf16.msra.mxu0 %v1306_v24  ;;  %1186 = vmatprep.subr.bf16.mxu1 %v1494_v0 }
  0x6c   : > { %1124 = vmatprep.subr.bf16.mxu0 %v1307_v25 }
  0x6e   : > { %1187 = vmatpush3.bf16.msra.mxu1 %v1308_v26 }
  0x6f   : > { %1125 = vmatpush3.bf16.msra.mxu0 %v1309_v28  ;;  %1188 = vmatprep.subr.bf16.mxu1 %v1494_v0 }
  0x70   : > { %1126 = vmatprep.subr.bf16.mxu0 %v1310_v30 }
  0x72   : > { %1189 = vmatpush3.bf16.msra.mxu1 %v1311_v34 }
  0x73   : > { %1127 = vmatpush3.bf16.msra.mxu0 %v1312_v36  ;;  %1194 = vmatprep.subr.bf16.mxu1 %v1494_v0 }
  0x74   : > { %1143 = vmatprep.subr.bf16.mxu0 %v1314_v44 }
  0x75   : > { %1191 = vmatmul.mubr.msk.bf16.vlgmr.msra.gmra.mxu1 %vm1722_vm12, %v318_v54 }
  0x76   : > { %1077 = vmatmul.mubr.msk.bf16.vlgmr.msra.gmra.mxu0 %vm1732_vm14, %v298_v55  ;;  %1195 = vmatpush3.bf16.msra.mxu1 %v1316_v49 }
  0x77   : > { %1144 = vmatpush3.bf16.msra.mxu0 %v1315_v50  ;;  %1196 = vmatprep.subr.bf16.mxu1 %v1494_v0  ;;  %v913_v50 = vsub.s32 2, %v1681_v12 }
  0x78   : > { %1145 = vmatprep.subr.bf16.mxu0 %v1317_v53  ;;  %1210 = vmatprep.mubr.msk.bf16.mxu1 %vm1495_vm0, %v1494_v0  ;;  %v919_v53 = vsub.s32 3, %v1681_v12  ;;  %v924_v12 = vunpack.c.h.bf16 %v1704_v33 }
  0x7a   : > { %1197 = vmatpush3.bf16.msra.mxu1 %v1319_v57  ;;  %v920_v48 = vrot.slane %v281_v17, %v919_v53 }
  0x7b   : > { %1146 = vmatpush3.bf16.msra.mxu0 %v1318_v56  ;;  %1198 = vmatprep.subr.bf16.mxu1 %v1494_v0  ;;  %v914_v56 = vrot.slane %v281_v17, %v913_v50 }
  0x7c   : > { %1147 = vmatprep.subr.bf16.mxu0 %v1320_v58 }
  0x7e   : > { %1199 = vmatpush3.bf16.msra.mxu1 %v1322_v60 }
  0x7f   : > { %1148 = vmatpush3.bf16.msra.mxu0 %v1321_v59  ;;  %1200 = vmatprep.subr.bf16.mxu1 %v1494_v0 }
  0x80   : > { %1149 = vmatprep.subr.bf16.mxu0 %v1323_v61 }
  0x82   : > { %1201 = vmatpush3.bf16.msra.mxu1 %v1325_v63 }
  0x83   : > { %1150 = vmatpush3.bf16.msra.mxu0 %v1324_v62  ;;  %1202 = vmatprep.subr.bf16.mxu1 %v1494_v0 }
  0x84   : > { %1151 = vmatprep.subr.bf16.mxu0 %v1326_v1 }
  0x86   : > { %1203 = vmatpush3.bf16.msra.mxu1 %v1328_v3 }
  0x87   : > { %1152 = vmatpush3.bf16.msra.mxu0 %v1327_v2  ;;  %1204 = vmatprep.subr.bf16.mxu1 %v1494_v0 }
  0x88   : > { %1153 = vmatprep.subr.bf16.mxu0 %v1329_v4 }
  0x8a   : > { %1205 = vmatpush3.bf16.msra.mxu1 %v1331_v6 }
  0x8b   : > { %1154 = vmatpush3.bf16.msra.mxu0 %v1330_v5  ;;  %1206 = vmatprep.subr.bf16.mxu1 %v1494_v0 }
  0x8c   : > { %1155 = vmatprep.subr.bf16.mxu0 %v1332_v7 }
  0x8e   : > { %1207 = vmatpush3.bf16.msra.mxu1 %v1334_v9 }
  0x8f   : > { %1156 = vmatpush3.bf16.msra.mxu0 %v1333_v8  ;;  %1208 = vmatprep.subr.bf16.mxu1 %v1494_v0 }
  0x90   : > { %1157 = vmatprep.subr.bf16.mxu0 %v1335_v10 }
  0x92   : > { %1209 = vmatpush3.bf16.msra.mxu1 %v1337_v13 }
  0x93   : > { %1158 = vmatpush3.bf16.msra.mxu0 %v1336_v11 }
 0x135   : > { %v600_v14 = vpop.f32.mrf.mxu1 }
 0x136   : > { %v1128_v16 = vpop.f32.mrf.mxu0 }
 0x137   : > { %v1192_v18 = vpop.f32.mrf.mxu1 }
 0x138   : > { %v1129_v19 = vpop.f32.mrf.mxu0 }
 0x139   : > { %v1130_v20 = vadd.f32 %v1129_v19, %v1128_v16  ;;  %v603_v22 = vpop.f32.mrf.mxu1 }
 0x13a   : > { %v1131_v24 = vpop.f32.mrf.mxu0 }
 0x13b   : > { %v601_v0 = vadd.f32 %v1130_v20, %v600_v14  ;;  %v1193_v25 = vpop.f32.mrf.mxu1 }
 0x13c   : > { %v1132_v26 = vpop.f32.mrf.mxu0 }
 0x13d   : > { %v611_v27 = vmul.f32 %v610_v21, %v601_v0  ;;  %v1133_v28 = vadd.f32 %v1132_v26, %v1131_v24 }
 0x13f   : > { %v604_v30 = vadd.f32 %v1133_v28, %v603_v22  ;;  %v617_v32 = vadd.f32 %v616_v29, %v611_v27 }
 0x141   : > { %v612_v31 = vmul.f32 %v610_v21, %v604_v30  ;;  %v619_v35 = vmax.f32 %v617_v32, 0.0 }
 0x143   : > { %v618_v34 = vadd.f32 %v616_v29, %v612_v31 }
 0x145   : > { %v620_v36 = vmax.f32 %v618_v34, 0.0 }
 0x147   : > { %v621_v37 = vpack.c.bf16 %v620_v36, %v619_v35 }
 0x149   : > { %v623_v38 = vshrl.u32 %v621_v37, 16  ;;  %v626_v39 = vshll.u32 %v621_v37, 16  ;;  %861 = vmatprep.mubr.bf16.mxu0 %v621_v37 }
 0x14b   : > { %v625_v40 = vrot.slane %v623_v38, 7  ;;  %v632_v42 = vrot.slane %v626_v39, 1 }
 0x14d   : > { %v628_v44 = vor.u32 %v626_v39, %v625_v40  ;;  %v633_v45 = vor.u32 %v632_v42, %v623_v38 }
 0x14f   : > { %v630_v46 = vsel %vm1728_vm13, 0, %v628_v44  ;;  %v635_v49 = vsel %vm1717_vm11, %v633_v45, 0 }
 0x150   : > { %1103 = vmatmul.mubr.msk.bf16.vlgmr.msra.gmra.mxu0 %vm1732_vm14, %v630_v46  ;;  %1211 = vmatmul.mubr.msk.bf16.vlgmr.msra.gmra.mxu1 %vm1722_vm12, %v635_v49 }
 0x210   : > { %v1159_v51 = vpop.f32.mrf.mxu0  ;;  %v904_v52 = vpop.f32.mrf.mxu1 }
 0x212   : > { %v1160_v54 = vpop.f32.mrf.mxu0  ;;  %v1212_v55 = vpop.f32.mrf.mxu1 }
 0x213   : > { %v1161_v47 = vadd.f32 %v1160_v54, %v1159_v51 }
 0x214   : > { %v1162_v57 = vpop.f32.mrf.mxu0  ;;  %v907_v41 = vpop.f32.mrf.mxu1 }
 0x215   : > { %v905_v58 = vadd.f32 %v1161_v47, %v904_v52 }
 0x216   : > { %v1163_v59 = vpop.f32.mrf.mxu0  ;;  %v1213_v60 = vpop.f32.mrf.mxu1 }
 0x217   : > { %v915_v61 = vmul.f32 %v914_v56, %v905_v58  ;;  %v1164_v62 = vadd.f32 %v1163_v59, %v1162_v57 }
 0x219   : > { %v921_v63 = vadd.f32 %v920_v48, %v915_v61  ;;  %v908_v1 = vadd.f32 %v1164_v62, %v907_v41 }
 0x21b   : > { %v925_v2 = vadd.f32 %v923_v43, %v921_v63  ;;  %v916_v3 = vmul.f32 %v914_v56, %v908_v1 }
 0x21d   : > { %v927_v4 = vmax.f32 %v925_v2, 0.0  ;;  %v922_v5 = vadd.f32 %v920_v48, %v916_v3 }
 0x21f   : > { %929 = vst [vmem:[%s244_s29] sm:$0xff] %v927_v4  ;;  %v926_v6 = vadd.f32 %v924_v12, %v922_v5 }
 0x221   : > { %v928_v33 = vmax.f32 %v926_v6, 0.0 }
 0x223   : > { %930 = vst [vmem:[%s244_s29 + $0x8] sm:$0xff] %v928_v33 }
 0x224   : > { %1432 = shalt.err (!%p1429_p3)
}
 0x225   : > { %s1433_s13 = scalar_lea.hbm %s1776_s27, 256  ;;  %s1437_s21 = scalar_lea.hbm %s1825_s4, 512 }
 0x226   : > { %p1434_p11 = scmp.ne.s32.totalorder %s1776_s27, %s1433_s13  ;;  %p1438_p4 = scmp.lt.s32.totalorder %s1776_s27, %s1825_s4 }
 0x227   : > { %p1439_p6 = scmp.lt.s32.totalorder %s1437_s21, %s1433_s13 }
 0x228   : > { %p1435_p9 = pnand %p1434_p11, %p1854_p2 }
 0x229   : > { %p1440_p8 = por %p1439_p6, %p1438_p4 }
 0x22a   : > { %p1436_p1 = pneg %p1435_p9 }
 0x22c   : > { %p1441_p5 = pnand %p1440_p8, %p1436_p1 }
 0x22e   : > { %1444 = shalt.err (!%p1441_p5)
}
 0x22f   : > { %s1499_s5 = smov 128   ;;  %s1500_s29 = smov 8  }
 0x230   : > { %1224 = dma.vmem_to_hbm [thread:$0]  (%p1854_p2), %s1778_s7, 256, %s1776_s27, %s932_s24, %s1499_s5, %s1499_s5, %s1500_s29  }
 0x231 PF: > { %s960_s8 = sand.u32 1, %s1475_s15   ;;  %p1855_p7 = scmp.ne.s32.totalorder %s1831_s22, 0 }
 0x232   : > { %p1856_p12 = scmp.ge.s32.totalorder %s1487_s18, 2  ;;  %s961_s9 = scalar_lea.sflag [#allocation4], %s960_s8 }
 0x234   : > { %p1238_p13 = pnand %p1856_p12, %p1855_p7 }
 0x236   : > { %p1239_p0 = pneg %p1238_p13 }
 0x238   : > { %1470 = dma.done.wait (%p1239_p0), %s961_s9, 256  }
 0x239   : > { %1472 = vsyncadd (%p1239_p0), %s961_s9, 4294967040  ;;  %p18_p10 = scmp.ge.s32.totalorder %s1604_s11, 4   ;;  %s1857_s15 = smov %s1479_s16 }
 0x23a   : > { %s1858_s16 = smov %s1483_s17  ;;  %s1859_s17 = smov %s1620_s20 }
 0x23b   : > { %s1860_s18 = smov %s1604_s11  ;;  %20 = sbr.rel (!%p18_p10) target bundleno = 6 (0x6), region = 89 }
 0x240   :  { %966 = vsyncpa [#allocation3], 1 }
 0x241   :  { %968 = vsyncpa [#allocation3 + $0x1], 1 }
 0x242   :  { %969 = vsyncpa [#allocation6], 1 }
 0x243   :  { %970 = vsyncpa [#allocation4], 1 }
 0x244   :  { %972 = vsyncpa [#allocation4 + $0x1], 1 }

</bundles_post_ra>
